<compile_context>
chip_gen: v6e
topology: v6e:2x2x1
jax: 0.10.0
libtpu: 0.0.40
codegen_flags: <defaults>
</compile_context>

<pallas_src>
import jax
import jax.numpy as jnp
from jax import lax
from jax.experimental import pallas as pl
from jax.experimental.pallas import tpu as pltpu


def _round_up(x, m):
    return (x + m - 1) // m * m


def _choose_tile(n):
    # Padding-aware: biggest MXU-friendly tile whose zero padding inflates the
    # (HBM-bound) adjacency traffic by <= ~15%; otherwise fall back to 128.
    for t in (1024, 512, 256):
        pad = _round_up(n, t)
        if pad * pad <= 1.15 * n * n:
            return t
    return 128


# ---------------------------------------------------------------------------
# Kernel 1 (1-D grid over row blocks): hn = norm * (X @ W^T + b)
# ---------------------------------------------------------------------------
def _hn_kernel(norm_ref, x_ref, wt_ref, b_ref, hn_ref):
    h = jnp.dot(x_ref[...], wt_ref[...],
                preferred_element_type=jnp.float32) + b_ref[...]
    hn_ref[...] = (norm_ref[...] * h).astype(hn_ref.dtype)


# ---------------------------------------------------------------------------
# Kernel 2 (grid (N/T, N/T)): out = norm * (adj @ hn + hn)
# ---------------------------------------------------------------------------
def _make_agg_kernel(tile, hn_resident):
    def kernel(norm_ref, adj_ref, hn_ref, o_ref):
        i = pl.program_id(0)
        k = pl.program_id(1)

        # o_ref's block index is constant over k -> it stays VMEM-resident and
        # doubles as the f32 accumulator (no scratch, no extra VPU copy).
        @pl.when(k == 0)
        def _():
            o_ref[...] = jnp.zeros_like(o_ref)

        if hn_resident:
            # hn lives fully in VMEM; slice out the current column block.
            col = pl.multiple_of(k * tile, tile)
            hn_blk = hn_ref[pl.ds(col, tile), :]
        else:
            hn_blk = hn_ref[...]

        o_ref[...] += jnp.dot(adj_ref[...], hn_blk,
                              preferred_element_type=jnp.float32)

        # Self-loop term of (adj + I) @ hn: only the diagonal tile contributes.
        @pl.when(k == i)
        def _():
            o_ref[...] += hn_blk.astype(jnp.float32)

        # Row-normalization epilogue on the last reduction step.
        @pl.when(k == pl.num_programs(1) - 1)
        def _():
            o_ref[...] = norm_ref[...] * o_ref[...]

    return kernel


# ---------------------------------------------------------------------------
# Wrapper
# ---------------------------------------------------------------------------
def gc_layer(adj, X, W, b, *, tile=None, adj_dtype=jnp.float32):
    """adj: (N,N) non-negative; X: (N,in_dim); W: (out_dim,in_dim); b: (out_dim,).

    adj_dtype=jnp.bfloat16 halves adj/hn HBM bytes (exact only for 0/1 edge
    weights); the f32 default keeps full accuracy for weighted graphs.
    """
    N = adj.shape[0]
    in_dim = X.shape[1]
    out_dim = W.shape[0]
    out_dtype = X.dtype
    f32 = jnp.float32

    if tile is None:
        tile = _choose_tile(N)
    n_pad = _round_up(N, tile)
    in_pad = _round_up(in_dim, 128)     # lane-dense LHS of the dense matmul
    out_pad = _round_up(out_dim, 128)   # lane-dense output (full vst)

    # ---- Degree / norm: one fused XLA pass over adj (no extra Pallas read) --
    deg = jnp.sum(adj.astype(f32), axis=1)
    norm = lax.rsqrt(deg + jnp.float32(1.0))     # self-loop folded into degree
    norm_p = jnp.pad(norm, (0, n_pad - N)).reshape(n_pad, 1)  # padded rows -> 0

    # ---- adj: avoid materializing a padded HBM copy when possible -----------
    if n_pad == N and adj.dtype == adj_dtype:
        adj_p = adj
    else:
        adj_p = jnp.pad(adj.astype(adj_dtype), ((0, n_pad - N), (0, n_pad - N)))

    x_p = jnp.pad(X.astype(f32), ((0, n_pad - N), (0, in_pad - in_dim)))
    wt_p = jnp.pad(W.T.astype(f32), ((0, in_pad - in_dim), (0, out_pad - out_dim)))
    b_p = jnp.pad(b.astype(f32).reshape(1, out_dim), ((0, 0), (0, out_pad - out_dim)))

    hn_dtype = jnp.bfloat16 if adj_dtype == jnp.bfloat16 else f32
    hn_itemsize = jnp.dtype(hn_dtype).itemsize
    adj_itemsize = jnp.dtype(adj_dtype).itemsize
    n_blocks = n_pad // tile

    # ---- Kernel 1: hn = norm * (X @ W^T + b) --------------------------------
    hn = pl.pallas_call(
        _hn_kernel,
        out_shape=jax.ShapeDtypeStruct((n_pad, out_pad), hn_dtype),
        grid=(n_blocks,),
        in_specs=[
            pl.BlockSpec((tile, 1), lambda i: (i, 0)),          # norm rows
            pl.BlockSpec((tile, in_pad), lambda i: (i, 0)),     # X rows
            pl.BlockSpec((in_pad, out_pad), lambda i: (0, 0)),  # W^T (whole)
            pl.BlockSpec((1, out_pad), lambda i: (0, 0)),       # bias
        ],
        out_specs=pl.BlockSpec((tile, out_pad), lambda i: (i, 0)),
        compiler_params=pltpu.CompilerParams(
            dimension_semantics=("parallel",)),
        cost_estimate=pl.CostEstimate(
            flops=int(2 * n_pad * in_pad * out_pad + 2 * n_pad * out_pad),
            transcendentals=0,
            bytes_accessed=int(4 * (n_pad * in_pad + in_pad * out_pad + n_pad)
                               + hn_itemsize * n_pad * out_pad),
        ),
    )(norm_p, x_p, wt_p, b_p)

    # ---- Kernel 2: out = norm * (adj @ hn + hn) -----------------------------
    hn_resident = n_pad * out_pad * hn_itemsize <= 4 * 1024 * 1024
    if hn_resident:
        hn_spec = pl.BlockSpec((n_pad, out_pad), lambda i, k: (0, 0))
    else:
        hn_spec = pl.BlockSpec((tile, out_pad), lambda i, k: (k, 0))

    hn_buf_rows = n_pad if hn_resident else tile
    vmem_need = (2 * tile * tile * adj_itemsize            # adj double-buffer
                 + 2 * hn_buf_rows * out_pad * hn_itemsize  # hn buffers
                 + 2 * tile * out_pad * 4                   # output block buffers
                 + 4 * tile * 4)                            # norm + slack
    vmem_limit = int(min(100 * 2**20, max(32 * 2**20, 2 * vmem_need)))

    out_p = pl.pallas_call(
        _make_agg_kernel(tile, hn_resident),
        out_shape=jax.ShapeDtypeStruct((n_pad, out_pad), f32),
        grid=(n_blocks, n_blocks),
        in_specs=[
            pl.BlockSpec((tile, 1), lambda i, k: (i, 0)),       # norm rows
            pl.BlockSpec((tile, tile), lambda i, k: (i, k)),    # adj tile
            hn_spec,                                            # hn
        ],
        out_specs=pl.BlockSpec((tile, out_pad), lambda i, k: (i, 0)),
        compiler_params=pltpu.CompilerParams(
            dimension_semantics=("parallel", "arbitrary"),
            vmem_limit_bytes=vmem_limit),
        cost_estimate=pl.CostEstimate(
            flops=int(2 * n_pad * n_pad * out_pad + 3 * n_pad * out_pad),
            transcendentals=0,
            bytes_accessed=int(adj_itemsize * n_pad * n_pad
                               + hn_itemsize * n_pad * out_pad
                               + 4 * n_pad * out_pad + 4 * n_pad),
        ),
    )(norm_p, adj_p, hn)

    return out_p[:N, :out_dim].astype(out_dtype)


def gc_layer_ref(adj, X, W, b):
    """Pure-JAX transcription of the PyTorch forward (high-precision matmuls)."""
    N = adj.shape[0]
    adj_i = adj + jnp.eye(N, dtype=adj.dtype)
    h = jnp.dot(X, W.T, precision=lax.Precision.HIGHEST) + b
    norm = jnp.sum(adj_i, axis=1) ** (-0.5)
    a_norm = norm[None, :] * adj_i * norm[:, None]
    return jnp.dot(a_norm, h, precision=lax.Precision.HIGHEST)


if __name__ == "__main__":
    # N=320 -> tile=128, n_pad=384, 3x3 grid: exercises the K accumulation,
    # the diagonal self-loop tile, N / in_dim / out_dim padding paths, and the
    # VMEM-resident-hn aggregation variant.
    N, in_dim, out_dim = 320, 16, 32
    key = jax.random.PRNGKey(0)
    k_adj, k_x, k_w, k_b = jax.random.split(key, 4)

    # Non-negative adjacency so degree ** (-1/2) is well defined.
    adj = jax.random.uniform(k_adj, (N, N), dtype=jnp.float32)
    X = jax.random.normal(k_x, (N, in_dim), dtype=jnp.float32)

    # Deterministic nn.Linear-style init (uniform in +/- 1/sqrt(in_dim)).
    bound = 1.0 / (in_dim ** 0.5)
    W = jax.random.uniform(k_w, (out_dim, in_dim), jnp.float32, -bound, bound)
    b = jax.random.uniform(k_b, (out_dim,), jnp.float32, -bound, bound)

    out = jax.block_until_ready(jax.jit(gc_layer)(adj, X, W, b))
    ref = gc_layer_ref(adj, X, W, b)

    assert out.shape == (N, out_dim)
    max_diff = float(jnp.max(jnp.abs(out - ref)))
    assert jnp.allclose(out, ref, rtol=1e-4, atol=1e-4), (
        f"mismatch vs reference, max abs diff = {max_diff}")

    print("KERNEL_OK")
</pallas_src>

<mosaic_0001>
module attributes {stable_mosaic.version = 11 : i64} {
  func.func @_hn_kernel(%arg0: i32, %arg1: memref<128x1xf32, #tpu.memory_space<vmem>>, %arg2: memref<128x128xf32, #tpu.memory_space<vmem>>, %arg3: memref<128x128xf32, #tpu.memory_space<vmem>>, %arg4: memref<1x128xf32, #tpu.memory_space<vmem>>, %arg5: memref<128x128xf32, #tpu.memory_space<vmem>>) attributes {dimension_semantics = [#tpu.dimension_semantics<parallel>], iteration_bounds = array<i64: 3>, scalar_prefetch = 0 : i64, scratch_operands = 0 : i64, tpu.core_type = #tpu.core_type<tc>, window_params = [{transform_indices = @transform_0, window_bounds = array<i64: 128, 1>}, {transform_indices = @transform_1, window_bounds = array<i64: 128, 128>}, {pipeline_mode = #tpu.pipeline_mode<synchronous>, transform_indices = @transform_2, window_bounds = array<i64: 128, 128>}, {pipeline_mode = #tpu.pipeline_mode<synchronous>, transform_indices = @transform_3, window_bounds = array<i64: 1, 128>}, {transform_indices = @transform_4, window_bounds = array<i64: 128, 128>}]} {
    %c0 = arith.constant 0 : index
    %c0_0 = arith.constant 0 : index
    %0 = vector.load %arg2[%c0, %c0_0] : memref<128x128xf32, #tpu.memory_space<vmem>>, vector<128x128xf32>
    %c0_1 = arith.constant 0 : index
    %c0_2 = arith.constant 0 : index
    %1 = vector.load %arg3[%c0_1, %c0_2] : memref<128x128xf32, #tpu.memory_space<vmem>>, vector<128x128xf32>
    %cst = arith.constant dense<0.000000e+00> : vector<128x128xf32>
    %2 = tpu.matmul %0, %1, %cst {dimension_numbers = #tpu.dot_dimension_numbers<[1], [0], [0], [1], [0, 0, 1, 1], [], []>} : vector<128x128xf32>, vector<128x128xf32>, vector<128x128xf32> -> vector<128x128xf32>
    %c0_3 = arith.constant 0 : index
    %c0_4 = arith.constant 0 : index
    %3 = vector.load %arg4[%c0_3, %c0_4] : memref<1x128xf32, #tpu.memory_space<vmem>>, vector<1x128xf32>
    %4 = vector.broadcast %3 : vector<1x128xf32> to vector<128x128xf32>
    %5 = arith.addf %2, %4 : vector<128x128xf32>
    %c0_5 = arith.constant 0 : index
    %c0_6 = arith.constant 0 : index
    %6 = vector.load %arg1[%c0_5, %c0_6] : memref<128x1xf32, #tpu.memory_space<vmem>>, vector<128x1xf32>
    %7 = vector.broadcast %6 : vector<128x1xf32> to vector<128x128xf32>
    %8 = arith.mulf %7, %5 : vector<128x128xf32>
    %c0_7 = arith.constant 0 : index
    %c0_8 = arith.constant 0 : index
    %9 = vector.load %arg5[%c0_7, %c0_8] : memref<128x128xf32, #tpu.memory_space<vmem>>, vector<128x128xf32>
    tpu.vector_store %arg5[%c0_7, %c0_8], %8 {strides = array<i32>} : memref<128x128xf32, #tpu.memory_space<vmem>>, vector<128x128xf32>,
    return
  }
  func.func @transform_0(%arg0: i32) -> (i32, i32) {
    %c0_i32 = arith.constant 0 : i32
    %c0_i32_0 = arith.constant 0 : i32
    return %arg0, %c0_i32 : i32, i32
  }
  func.func @transform_1(%arg0: i32) -> (i32, i32) {
    %c0_i32 = arith.constant 0 : i32
    %c0_i32_0 = arith.constant 0 : i32
    return %arg0, %c0_i32 : i32, i32
  }
  func.func @transform_2(%arg0: i32) -> (i32, i32) {
    %c0_i32 = arith.constant 0 : i32
    %c0_i32_0 = arith.constant 0 : i32
    %c0_i32_1 = arith.constant 0 : i32
    return %c0_i32, %c0_i32_0 : i32, i32
  }
  func.func @transform_3(%arg0: i32) -> (i32, i32) {
    %c0_i32 = arith.constant 0 : i32
    %c0_i32_0 = arith.constant 0 : i32
    %c0_i32_1 = arith.constant 0 : i32
    return %c0_i32, %c0_i32_0 : i32, i32
  }
  func.func @transform_4(%arg0: i32) -> (i32, i32) {
    %c0_i32 = arith.constant 0 : i32
    %c0_i32_0 = arith.constant 0 : i32
    return %arg0, %c0_i32 : i32, i32
  }
}

module attributes {stable_mosaic.version = 11 : i64} {
  func.func @kernel(%arg0: i32, %arg1: i32, %arg2: memref<128x1xf32, #tpu.memory_space<vmem>>, %arg3: memref<128x128xf32, #tpu.memory_space<vmem>>, %arg4: memref<384x128xf32, #tpu.memory_space<vmem>>, %arg5: memref<128x128xf32, #tpu.memory_space<vmem>>) attributes {dimension_semantics = [#tpu.dimension_semantics<parallel>, #tpu.dimension_semantics<arbitrary>], iteration_bounds = array<i64: 3, 3>, scalar_prefetch = 0 : i64, scratch_operands = 0 : i64, tpu.core_type = #tpu.core_type<tc>, window_params = [{transform_indices = @transform_0, window_bounds = array<i64: 128, 1>}, {transform_indices = @transform_1, window_bounds = array<i64: 128, 128>}, {pipeline_mode = #tpu.pipeline_mode<synchronous>, transform_indices = @transform_2, window_bounds = array<i64: 384, 128>}, {transform_indices = @transform_3, window_bounds = array<i64: 128, 128>}]} {
    %c0_i32 = arith.constant 0 : i32
    %0 = arith.cmpi eq, %arg1, %c0_i32 : i32
    %1 = arith.extui %0 : i1 to i32
    %c0_i32_0 = arith.constant 0 : i32
    %2 = arith.cmpi ne, %1, %c0_i32_0 : i32
    scf.if %2 {
      %cst_9 = arith.constant 0.000000e+00 : f32
      %18 = vector.broadcast %cst_9 : f32 to vector<128x128xf32>
      %c0_10 = arith.constant 0 : index
      %c0_11 = arith.constant 0 : index
      %19 = vector.load %arg5[%c0_10, %c0_11] : memref<128x128xf32, #tpu.memory_space<vmem>>, vector<128x128xf32>
      tpu.vector_store %arg5[%c0_10, %c0_11], %18 {strides = array<i32>} : memref<128x128xf32, #tpu.memory_space<vmem>>, vector<128x128xf32>,
    } else {
    }
    %c128_i32 = arith.constant 128 : i32
    %3 = arith.muli %arg1, %c128_i32 : i32
    %4 = tpu.assume_multiple %3, 128 : i32
    %5 = arith.index_cast %4 : i32 to index
    %c0 = arith.constant 0 : index
    %6 = vector.load %arg4[%5, %c0] : memref<384x128xf32, #tpu.memory_space<vmem>>, vector<128x128xf32>
    %c0_1 = arith.constant 0 : index
    %c0_2 = arith.constant 0 : index
    %7 = vector.load %arg5[%c0_1, %c0_2] : memref<128x128xf32, #tpu.memory_space<vmem>>, vector<128x128xf32>
    %c0_3 = arith.constant 0 : index
    %c0_4 = arith.constant 0 : index
    %8 = vector.load %arg3[%c0_3, %c0_4] : memref<128x128xf32, #tpu.memory_space<vmem>>, vector<128x128xf32>
    %cst = arith.constant dense<0.000000e+00> : vector<128x128xf32>
    %9 = tpu.matmul %8, %6, %cst {dimension_numbers = #tpu.dot_dimension_numbers<[1], [0], [0], [1], [0, 0, 1, 1], [], []>} : vector<128x128xf32>, vector<128x128xf32>, vector<128x128xf32> -> vector<128x128xf32>
    %10 = arith.addf %7, %9 : vector<128x128xf32>
    %c0_5 = arith.constant 0 : index
    %c0_6 = arith.constant 0 : index
    %11 = vector.load %arg5[%c0_5, %c0_6] : memref<128x128xf32, #tpu.memory_space<vmem>>, vector<128x128xf32>
    tpu.vector_store %arg5[%c0_5, %c0_6], %10 {strides = array<i32>} : memref<128x128xf32, #tpu.memory_space<vmem>>, vector<128x128xf32>,
    %12 = arith.cmpi eq, %arg1, %arg0 : i32
    %13 = arith.extui %12 : i1 to i32
    %c0_i32_7 = arith.constant 0 : i32
    %14 = arith.cmpi ne, %13, %c0_i32_7 : i32
    scf.if %14 {
      %c0_9 = arith.constant 0 : index
      %c0_10 = arith.constant 0 : index
      %18 = vector.load %arg5[%c0_9, %c0_10] : memref<128x128xf32, #tpu.memory_space<vmem>>, vector<128x128xf32>
      %19 = arith.addf %18, %6 : vector<128x128xf32>
      %c0_11 = arith.constant 0 : index
      %c0_12 = arith.constant 0 : index
      %20 = vector.load %arg5[%c0_11, %c0_12] : memref<128x128xf32, #tpu.memory_space<vmem>>, vector<128x128xf32>
      tpu.vector_store %arg5[%c0_11, %c0_12], %19 {strides = array<i32>} : memref<128x128xf32, #tpu.memory_space<vmem>>, vector<128x128xf32>,
    } else {
    }
    %c2_i32 = arith.constant 2 : i32
    %15 = arith.cmpi eq, %arg1, %c2_i32 : i32
    %16 = arith.extui %15 : i1 to i32
    %c0_i32_8 = arith.constant 0 : i32
    %17 = arith.cmpi ne, %16, %c0_i32_8 : i32
    scf.if %17 {
      %c0_9 = arith.constant 0 : index
      %c0_10 = arith.constant 0 : index
      %18 = vector.load %arg2[%c0_9, %c0_10] : memref<128x1xf32, #tpu.memory_space<vmem>>, vector<128x1xf32>
      %c0_11 = arith.constant 0 : index
      %c0_12 = arith.constant 0 : index
      %19 = vector.load %arg5[%c0_11, %c0_12] : memref<128x128xf32, #tpu.memory_space<vmem>>, vector<128x128xf32>
      %20 = vector.broadcast %18 : vector<128x1xf32> to vector<128x128xf32>
      %21 = arith.mulf %20, %19 : vector<128x128xf32>
      %c0_13 = arith.constant 0 : index
      %c0_14 = arith.constant 0 : index
      %22 = vector.load %arg5[%c0_13, %c0_14] : memref<128x128xf32, #tpu.memory_space<vmem>>, vector<128x128xf32>
      tpu.vector_store %arg5[%c0_13, %c0_14], %21 {strides = array<i32>} : memref<128x128xf32, #tpu.memory_space<vmem>>, vector<128x128xf32>,
    } else {
    }
    return
  }
  func.func @transform_0(%arg0: i32, %arg1: i32) -> (i32, i32) {
    %c0_i32 = arith.constant 0 : i32
    %c0_i32_0 = arith.constant 0 : i32
    return %arg0, %c0_i32 : i32, i32
  }
  func.func @transform_1(%arg0: i32, %arg1: i32) -> (i32, i32) {
    %c0_i32 = arith.constant 0 : i32
    return %arg0, %arg1 : i32, i32
  }
  func.func @transform_2(%arg0: i32, %arg1: i32) -> (i32, i32) {
    %c0_i32 = arith.constant 0 : i32
    %c0_i32_0 = arith.constant 0 : i32
    %c0_i32_1 = arith.constant 0 : i32
    return %c0_i32, %c0_i32_0 : i32, i32
  }
  func.func @transform_3(%arg0: i32, %arg1: i32) -> (i32, i32) {
    %c0_i32 = arith.constant 0 : i32
    %c0_i32_0 = arith.constant 0 : i32
    return %arg0, %c0_i32 : i32, i32
  }
}

</mosaic_0001>

<bundles_post_ra>
// kernel: gc_layer.2
= control target key start
LH: loop header
LB: loop body
LE: loop exit
PB: predicated region body
PF: predicated region fallthrough
CT: control target
= control target key end

     0   :  { %s782_s15 = smov 0   ;;  %s938_s0 = inlined_call_operand.vmem [shape: f32[384,1], index: 0, kind: input, shape index: {}]   ;;  %s939_s1 = inlined_call_operand.vmem [shape: f32[384,128], index: 1, kind: input, shape index: {}]   ;;  %s940_s2 = inlined_call_operand.vmem [shape: f32[128,128], index: 2, kind: input, shape index: {}]   ;;  %s941_s3 = inlined_call_operand.vmem [shape: f32[1,128], index: 3, kind: input, shape index: {}]   ;;  %s942_s4 = inlined_call_operand.vmem [shape: f32[384,128], index: 4, kind: output, shape index: {}]  }
   0x1 LB: > { %s603_s16 = sadd.s32 4294967295, %s754_s15   ;;  %p607_p0 = scmp.ge.s32.totalorder %s754_s15, 1  ;;  %s754_s15 = sphi %s782_s15, %s14_s15  }
   0x2   : > { %p174_p1 = scmp.lt.s32.totalorder %s754_s15, 4 }
   0x4   : > { %p175_p2 = pnand %p607_p0, %p174_p1 }
   0x5   : > { %s608_s7 = sshll.u32 (!%p175_p2), %s603_s16, 4 }
   0x6   : > { %178 = sbr.rel (%p175_p2) target bundleno = 257 (0x101), region = 36  ;;  %p206_p3 = scmp.lt.s32.totalorder (!%p175_p2), %s608_s7, 47 }
   0xb   : > { %v254_v0 = vld [vmem:[%s940_s2 + $0x78] sm:$0xff]  ;;  %v253_v1 = vld [vmem:[%s940_s2 + $0x70] sm:$0xff]  ;;  %v252_v2 = vld [vmem:[%s940_s2 + $0x68] sm:$0xff]  ;;  %s944_s7 = smov (!%p206_p3, %s608_s7), 47  ;;  %v756_v28 = vmov 0  }
   0xc   : > { %649 = vmatprep.subr.mxu0 %v254_v0  ;;  %705 = vmatprep.subr.mxu1 %v254_v0  ;;  %v251_v3 = vld [vmem:[%s940_s2 + $0x60] sm:$0xff]  ;;  %v250_v4 = vld [vmem:[%s940_s2 + $0x58] sm:$0xff]  ;;  %v249_v5 = vld [vmem:[%s940_s2 + $0x50] sm:$0xff]  ;;  %s834_s21 = sshll.u32 %s944_s7, 3 }
   0xd   : > { %650 = vmatpush3.msra.mxu0 %v254_v0  ;;  %721 = vmatpush3.msra.mxu1 %v254_v0  ;;  %v248_v6 = vld [vmem:[%s940_s2 + $0x48] sm:$0xff]  ;;  %v247_v7 = vld [vmem:[%s940_s2 + $0x40] sm:$0xff]  ;;  %v246_v8 = vld [vmem:[%s940_s2 + $0x38] sm:$0xff]  ;;  %s843_s26 = scalar_lea.vmem %s939_s1, %s834_s21  ;;  %s856_s5 = scalar_lea.vmem %s938_s0, %s834_s21 }
   0xe   : > { %651 = vmatprep.subr.mxu0 %v253_v1  ;;  %706 = vmatprep.subr.mxu1 %v253_v1  ;;  %v245_v9 = vld [vmem:[%s940_s2 + $0x30] sm:$0xff]  ;;  %v244_v10 = vld [vmem:[%s940_s2 + $0x28] sm:$0xff]  ;;  %v243_v11 = vld [vmem:[%s940_s2 + $0x20] sm:$0xff]  ;;  %s901_s10 = scalar_lea.vmem %s942_s4, %s834_s21 }
   0xf   : > { %652 = vmatpush3.msra.mxu0 %v253_v1  ;;  %722 = vmatpush3.msra.mxu1 %v253_v1  ;;  %v242_v12 = vld [vmem:[%s940_s2 + $0x18] sm:$0xff]  ;;  %v241_v13 = vld [vmem:[%s940_s2 + $0x10] sm:$0xff]  ;;  %v240_v14 = vld [vmem:[%s940_s2 + $0x8] sm:$0xff] }
  0x10   : > { %653 = vmatprep.subr.mxu0 %v252_v2  ;;  %707 = vmatprep.subr.mxu1 %v252_v2  ;;  %v239_v15 = vld [vmem:[%s940_s2] sm:$0xff]  ;;  %v224_v18 = vld [vmem:[%s843_s26 + $0x8] sm:$0xff]  ;;  %v225_v20 = vld [vmem:[%s843_s26 + $0x10] sm:$0xff] }
  0x11   : > { %654 = vmatpush3.msra.mxu0 %v252_v2  ;;  %723 = vmatpush3.msra.mxu1 %v252_v2  ;;  %v223_v16 = vld [vmem:[%s843_s26] sm:$0xff]  ;;  %v232_v19 = vld [vmem:[%s843_s26 + $0x48] sm:$0xff]  ;;  %v233_v21 = vld [vmem:[%s843_s26 + $0x50] sm:$0xff] }
  0x12   : > { %655 = vmatprep.subr.mxu0 %v251_v3  ;;  %708 = vmatprep.subr.mxu1 %v251_v3  ;;  %v231_v17 = vld [vmem:[%s843_s26 + $0x40] sm:$0xff]  ;;  %v409_v22 = vld [vmem:[%s856_s5 + $0x10] sm:$0xff]  ;;  %v226_v24 = vld [vmem:[%s843_s26 + $0x18] sm:$0xff] }
  0x13   : > { %656 = vmatpush3.msra.mxu0 %v251_v3  ;;  %724 = vmatpush3.msra.mxu1 %v251_v3  ;;  %v407_v23 = vld [vmem:[%s856_s5] sm:$0xff]  ;;  %v234_v25 = vld [vmem:[%s843_s26 + $0x58] sm:$0xff]  ;;  %v408_v30 = vld [vmem:[%s856_s5 + $0x8] sm:$0xff] }
  0x14   : > { %657 = vmatprep.subr.mxu0 %v250_v4  ;;  %709 = vmatprep.subr.mxu1 %v250_v4  ;;  %v227_v26 = vld [vmem:[%s843_s26 + $0x20] sm:$0xff]  ;;  %v410_v29 = vld [vmem:[%s856_s5 + $0x18] sm:$0xff]  ;;  %v228_v31 = vld [vmem:[%s843_s26 + $0x28] sm:$0xff] }
  0x15   : > { %658 = vmatpush3.msra.mxu0 %v250_v4  ;;  %725 = vmatpush3.msra.mxu1 %v250_v4  ;;  %v235_v27 = vld [vmem:[%s843_s26 + $0x60] sm:$0xff]  ;;  %v236_v32 = vld [vmem:[%s843_s26 + $0x68] sm:$0xff]  ;;  %v229_v33 = vld [vmem:[%s843_s26 + $0x30] sm:$0xff] }
  0x16   : > { %659 = vmatprep.subr.mxu0 %v249_v5  ;;  %710 = vmatprep.subr.mxu1 %v249_v5  ;;  %v237_v34 = vld [vmem:[%s843_s26 + $0x70] sm:$0xff]  ;;  %v412_v35 = vld [vmem:[%s856_s5 + $0x28] sm:$0xff]  ;;  %v411_v36 = vld [vmem:[%s856_s5 + $0x20] sm:$0xff] }
  0x17   : > { %660 = vmatpush3.msra.mxu0 %v249_v5  ;;  %726 = vmatpush3.msra.mxu1 %v249_v5  ;;  %v230_v37 = vld [vmem:[%s843_s26 + $0x38] sm:$0xff]  ;;  %v413_v40 = vld [vmem:[%s856_s5 + $0x30] sm:$0xff]  ;;  %v416_v41 = vld [vmem:[%s856_s5 + $0x48] sm:$0xff] }
  0x18   : > { %661 = vmatprep.subr.mxu0 %v248_v6  ;;  %711 = vmatprep.subr.mxu1 %v248_v6  ;;  %v238_v38 = vld [vmem:[%s843_s26 + $0x78] sm:$0xff]  ;;  %v415_v42 = vld [vmem:[%s856_s5 + $0x40] sm:$0xff]  ;;  %v417_v44 = vld [vmem:[%s856_s5 + $0x50] sm:$0xff] }
  0x19   : > { %662 = vmatpush3.msra.mxu0 %v248_v6  ;;  %727 = vmatpush3.msra.mxu1 %v248_v6  ;;  %v414_v39 = vld [vmem:[%s856_s5 + $0x38] sm:$0xff]  ;;  %v420_v45 = vld [vmem:[%s856_s5 + $0x68] sm:$0xff]  ;;  %v419_v46 = vld [vmem:[%s856_s5 + $0x60] sm:$0xff] }
  0x1a   : > { %663 = vmatprep.subr.mxu0 %v247_v7  ;;  %712 = vmatprep.subr.mxu1 %v247_v7  ;;  %v418_v43 = vld [vmem:[%s856_s5 + $0x58] sm:$0xff]  ;;  %v421_v48 = vld [vmem:[%s856_s5 + $0x70] sm:$0xff]  ;;  %v893_v59 = vld [vmem:[%s941_s3] ss:$0 sm:$0xff] }
  0x1b   : > { %664 = vmatpush3.msra.mxu0 %v247_v7  ;;  %728 = vmatpush3.msra.mxu1 %v247_v7  ;;  %v422_v47 = vld [vmem:[%s856_s5 + $0x78] sm:$0xff] }
  0x1c   : > { %665 = vmatprep.subr.mxu0 %v246_v8  ;;  %713 = vmatprep.subr.mxu1 %v246_v8 }
  0x1d   : > { %666 = vmatpush3.msra.mxu0 %v246_v8  ;;  %729 = vmatpush3.msra.mxu1 %v246_v8 }
  0x1e   : > { %667 = vmatprep.subr.mxu0 %v245_v9  ;;  %714 = vmatprep.subr.mxu1 %v245_v9 }
  0x1f   : > { %668 = vmatpush3.msra.mxu0 %v245_v9  ;;  %730 = vmatpush3.msra.mxu1 %v245_v9 }
  0x20   : > { %669 = vmatprep.subr.mxu0 %v244_v10  ;;  %715 = vmatprep.subr.mxu1 %v244_v10 }
  0x21   : > { %670 = vmatpush3.msra.mxu0 %v244_v10  ;;  %731 = vmatpush3.msra.mxu1 %v244_v10 }
  0x22   : > { %671 = vmatprep.subr.mxu0 %v243_v11  ;;  %716 = vmatprep.subr.mxu1 %v243_v11 }
  0x23   : > { %672 = vmatpush3.msra.mxu0 %v243_v11  ;;  %732 = vmatpush3.msra.mxu1 %v243_v11 }
  0x24   : > { %673 = vmatprep.subr.mxu0 %v242_v12  ;;  %717 = vmatprep.subr.mxu1 %v242_v12 }
  0x25   : > { %674 = vmatpush3.msra.mxu0 %v242_v12  ;;  %733 = vmatpush3.msra.mxu1 %v242_v12 }
  0x26   : > { %675 = vmatprep.subr.mxu0 %v241_v13  ;;  %718 = vmatprep.subr.mxu1 %v241_v13 }
  0x27   : > { %676 = vmatpush3.msra.mxu0 %v241_v13  ;;  %734 = vmatpush3.msra.mxu1 %v241_v13 }
  0x28   : > { %677 = vmatprep.subr.mxu0 %v240_v14  ;;  %719 = vmatprep.subr.mxu1 %v240_v14 }
  0x29   : > { %678 = vmatpush3.msra.mxu0 %v240_v14  ;;  %735 = vmatpush3.msra.mxu1 %v240_v14 }
  0x2a   : > { %679 = vmatprep.subr.mxu0 %v239_v15  ;;  %720 = vmatprep.subr.mxu1 %v239_v15 }
  0x2b   : > { %680 = vmatpush3.msra.mxu0 %v239_v15  ;;  %736 = vmatpush3.msra.mxu1 %v239_v15 }
  0x2c   : > { %681 = vmatprep.mubr.f32.mxu0 %v223_v16  ;;  %693 = vmatprep.mubr.f32.mxu1 %v231_v17 }
  0x2d   : > { %682 = vmatmul.mubr.f32.vlgmr.msra.gmra.mxu0 %v224_v18  ;;  %694 = vmatmul.mubr.f32.vlgmr.msra.gmra.mxu1 %v232_v19 }
  0x2e   : > { %684 = vmatprep.mubr.f32.mxu0 %v225_v20  ;;  %696 = vmatprep.mubr.f32.mxu1 %v233_v21 }
  0x2f   : > { %747 = vset.pattern.permute.xlu1 %v756_v28  ;;  %746 = vset.pattern.permute.xlu0 %v756_v28 }
  0x30   : > { %435 = vperm.xlu1 %747, %v409_v22   ;;  %425 = vperm.xlu0 %746, %v407_v23  }
  0x31   : > { %685 = vmatmul.mubr.f32.gmra.mxu0 %v226_v24  ;;  %697 = vmatmul.mubr.f32.gmra.mxu1 %v234_v25 }
  0x32   : > { %687 = vmatprep.mubr.f32.mxu0 %v227_v26  ;;  %699 = vmatprep.mubr.f32.mxu1 %v235_v27 }
  0x34   : > { %440 = vperm.xlu1 %747, %v410_v29   ;;  %430 = vperm.xlu0 %746, %v408_v30  }
  0x35   : > { %688 = vmatmul.mubr.f32.gmra.mxu0 %v228_v31  ;;  %700 = vmatmul.mubr.f32.gmra.mxu1 %v236_v32 }
  0x36   : > { %690 = vmatprep.mubr.f32.mxu0 %v229_v33  ;;  %702 = vmatprep.mubr.f32.mxu1 %v237_v34 }
  0x38   : > { %450 = vperm.xlu1 %747, %v412_v35   ;;  %445 = vperm.xlu0 %746, %v411_v36  }
  0x39   : > { %691 = vmatmul.mubr.f32.gmra.mxu0 %v230_v37  ;;  %703 = vmatmul.mubr.f32.gmra.mxu1 %v238_v38 }
  0x3c   : > { %460 = vperm.xlu1 %747, %v414_v39   ;;  %455 = vperm.xlu0 %746, %v413_v40  }
  0x40   : > { %470 = vperm.xlu1 %747, %v416_v41   ;;  %465 = vperm.xlu0 %746, %v415_v42  }
  0x44   : > { %480 = vperm.xlu1 %747, %v418_v43   ;;  %475 = vperm.xlu0 %746, %v417_v44  }
  0x48   : > { %490 = vperm.xlu1 %747, %v420_v45   ;;  %485 = vperm.xlu0 %746, %v419_v46  }
  0x4c   : > { %500 = vperm.xlu1 %747, %v422_v47   ;;  %495 = vperm.xlu0 %746, %v421_v48  }
  0xab   : > { %v436_v49 = vpop.permute.xlu1 %435  ;;  %v426_v50 = vpop.permute.xlu0 %425 }
  0xaf   : > { %v441_v51 = vpop.permute.xlu1 %440  ;;  %v431_v52 = vpop.permute.xlu0 %430 }
  0xb3   : > { %v451_v53 = vpop.permute.xlu1 %450  ;;  %v446_v54 = vpop.permute.xlu0 %445 }
  0xb7   : > { %v886_v55 = vpop.permute.xlu1 %460  ;;  %v888_v56 = vpop.permute.xlu0 %455 }
  0xbb   : > { %v471_v57 = vpop.permute.xlu1 %470  ;;  %v466_v58 = vpop.permute.xlu0 %465 }
  0xbf   : > { %v481_v62 = vpop.permute.xlu1 %480  ;;  %v476_v3 = vpop.permute.xlu0 %475 }
  0xc3   : > { %v491_v16 = vpop.permute.xlu1 %490  ;;  %v486_v23 = vpop.permute.xlu0 %485 }
  0xc7   : > { %v501_v36 = vpop.permute.xlu1 %500  ;;  %v496_v47 = vpop.permute.xlu0 %495 }
  0xed   : > { %v683_v60 = vpop.f32.mrf.mxu0  ;;  %v695_v61 = vpop.f32.mrf.mxu1 }
  0xee   : > { %v334_v63 = vadd.f32 %v683_v60, %v893_v59  ;;  %v374_v0 = vadd.f32 %v695_v61, %v893_v59 }
  0xef   : > { %v328_v1 = vpop.f32.mrf.mxu0  ;;  %v368_v2 = vpop.f32.mrf.mxu1 }
  0xf0   : > { %v504_v4 = vmul.f32 %v431_v52, %v334_v63  ;;  %v512_v5 = vmul.f32 %v471_v57, %v374_v0  ;;  %v329_v6 = vadd.f32 %v893_v59, %v328_v1  ;;  %v369_v7 = vadd.f32 %v893_v59, %v368_v2 }
  0xf1   : > { %v686_v8 = vpop.f32.mrf.mxu0  ;;  %v698_v9 = vpop.f32.mrf.mxu1 }
  0xf2   : > { %520 = vst [vmem:[%s901_s10 + $0x8] sm:$0xff] %v504_v4  ;;  %528 = vst [vmem:[%s901_s10 + $0x48] sm:$0xff] %v512_v5  ;;  %v503_v10 = vmul.f32 %v426_v50, %v329_v6  ;;  %v511_v11 = vmul.f32 %v466_v58, %v369_v7  ;;  %v344_v12 = vadd.f32 %v686_v8, %v893_v59 }
  0xf3   : > { %v384_v13 = vadd.f32 %v698_v9, %v893_v59  ;;  %v338_v14 = vpop.f32.mrf.mxu0  ;;  %v378_v15 = vpop.f32.mrf.mxu1 }
  0xf4   : > { %519 = vst [vmem:[%s901_s10] sm:$0xff] %v503_v10  ;;  %527 = vst [vmem:[%s901_s10 + $0x40] sm:$0xff] %v511_v11  ;;  %v506_v17 = vmul.f32 %v441_v51, %v344_v12  ;;  %v339_v19 = vadd.f32 %v893_v59, %v338_v14  ;;  %v379_v20 = vadd.f32 %v893_v59, %v378_v15 }
  0xf5   : > { %v514_v18 = vmul.f32 %v481_v62, %v384_v13  ;;  %v689_v21 = vpop.f32.mrf.mxu0  ;;  %v701_v22 = vpop.f32.mrf.mxu1 }
  0xf6   : > { %522 = vst [vmem:[%s901_s10 + $0x18] sm:$0xff] %v506_v17  ;;  %v505_v24 = vmul.f32 %v436_v49, %v339_v19  ;;  %v513_v25 = vmul.f32 %v476_v3, %v379_v20  ;;  %v354_v26 = vadd.f32 %v689_v21, %v893_v59  ;;  %v394_v27 = vadd.f32 %v701_v22, %v893_v59 }
  0xf7   : > { %530 = vst [vmem:[%s901_s10 + $0x58] sm:$0xff] %v514_v18  ;;  %v348_v28 = vpop.f32.mrf.mxu0  ;;  %v388_v29 = vpop.f32.mrf.mxu1 }
  0xf8   : > { %521 = vst [vmem:[%s901_s10 + $0x10] sm:$0xff] %v505_v24  ;;  %529 = vst [vmem:[%s901_s10 + $0x50] sm:$0xff] %v513_v25  ;;  %v508_v30 = vmul.f32 %v451_v53, %v354_v26  ;;  %v516_v31 = vmul.f32 %v491_v16, %v394_v27  ;;  %v349_v32 = vadd.f32 %v893_v59, %v348_v28 }
  0xf9   : > { %v389_v33 = vadd.f32 %v893_v59, %v388_v29  ;;  %v692_v34 = vpop.f32.mrf.mxu0  ;;  %v704_v35 = vpop.f32.mrf.mxu1 }
  0xfa   : > { %524 = vst [vmem:[%s901_s10 + $0x28] sm:$0xff] %v508_v30  ;;  %532 = vst [vmem:[%s901_s10 + $0x68] sm:$0xff] %v516_v31  ;;  %v507_v37 = vmul.f32 %v446_v54, %v349_v32  ;;  %v364_v39 = vadd.f32 %v692_v34, %v893_v59  ;;  %v404_v40 = vadd.f32 %v704_v35, %v893_v59 }
  0xfb   : > { %v515_v38 = vmul.f32 %v486_v23, %v389_v33  ;;  %v358_v41 = vpop.f32.mrf.mxu0  ;;  %v398_v42 = vpop.f32.mrf.mxu1 }
  0xfc   : > { %523 = vst [vmem:[%s901_s10 + $0x20] sm:$0xff] %v507_v37  ;;  %v510_v43 = vmul.f32 %v886_v55, %v364_v39  ;;  %v518_v44 = vmul.f32 %v501_v36, %v404_v40  ;;  %v359_v45 = vadd.f32 %v893_v59, %v358_v41  ;;  %v399_v46 = vadd.f32 %v893_v59, %v398_v42 }
  0xfd   : > { %531 = vst [vmem:[%s901_s10 + $0x60] sm:$0xff] %v515_v38 }
  0xfe   : > { %526 = vst [vmem:[%s901_s10 + $0x38] sm:$0xff] %v510_v43  ;;  %534 = vst [vmem:[%s901_s10 + $0x78] sm:$0xff] %v518_v44  ;;  %v509_v48 = vmul.f32 %v888_v56, %v359_v45  ;;  %v517_v49 = vmul.f32 %v496_v47, %v399_v46 }
 0x100   : > { %525 = vst [vmem:[%s901_s10 + $0x30] sm:$0xff] %v509_v48  ;;  %533 = vst [vmem:[%s901_s10 + $0x70] sm:$0xff] %v517_v49 }
 0x101 PF: > { %s14_s15 = sadd.s32 1, %s754_s15  }
 0x102   : > { %p11_p4 = scmp.ge.s32.totalorder %s14_s15, 5  }
 0x104   :  { %13 = sbr.rel (!%p11_p4) target bundleno = 1 (0x1), region = 69 }

// kernel: gc_layer.3
= control target key start
LH: loop header
LB: loop body
LE: loop exit
PB: predicated region body
PF: predicated region fallthrough
CT: control target
= control target key end

     0   :  { %s1123_s12 = smov 0   ;;  %s1125_s13 = smov 0   ;;  %s1520_s0 = inlined_call_operand.vmem [shape: f32[384,1], index: 0, kind: input, shape index: {}]   ;;  %s1521_s1 = inlined_call_operand.vmem [shape: f32[384,384], index: 1, kind: input, shape index: {}]   ;;  %s1522_s2 = inlined_call_operand.vmem [shape: f32[384,128], index: 2, kind: input, shape index: {}]   ;;  %s1523_s3 = inlined_call_operand.vmem [shape: f32[384,128], index: 3, kind: output, shape index: {}]  }
   0x1   :  { %s1127_s14 = smov 0   ;;  %s1129_s15 = smov 0  }
   0x2   :  { %s1131_s16 = smov 0   ;;  %s1133_s17 = smov 0  }
   0x3   :  { %s1135_s18 = smov 0  }
   0x4 LB: > { %s22_s19 = sadd.s32 1, %s1091_s16  ;;  %s25_s20 = sadd.s32 1, %s1095_s17  ;;  %s1099_s18 = sphi %s1135_s18, %s13_s18   ;;  %s1095_s17 = sphi %s1133_s17, %s1529_s17   ;;  %s1091_s16 = sphi %s1131_s16, %s1528_s16   ;;  %s1087_s15 = sphi %s1129_s15, %s1527_s15   ;;  %s1083_s14 = sphi %s1127_s14, %s1526_s14   ;;  %s1079_s13 = sphi %s1125_s13, %s1525_s13   ;;  %s1075_s12 = sphi %s1123_s12, %s1524_s12  }
   0x5   : > { %p23_p0 = scmp.ge.s32.totalorder %s22_s19, 3  ;;  %p67_p1 = scmp.ne.s32.totalorder %s1079_s13, %s1075_s12 }
   0x6   : > { %p68_p2 = scmp.eq.s32.totalorder %s1099_s18, 0  ;;  %s60_s24 = sadd.s32 1, %s1079_s13 }
   0x7   : > { %s1531_s19 = smov (%p23_p0, %s22_s19), 0  ;;  %s1533_s20 = smov (!%p23_p0, %s25_s20), %s1095_s17 }
   0x8   : > { %p69_p3 = por %p68_p2, %p67_p1  ;;  %p27_p4 = scmp.ge.s32.totalorder %s1533_s20, 3 }
   0x9   : > { %s56_s21 = ssub.s32 %s1091_s16, %s1531_s19  ;;  %p847_p6 = scmp.ge.s32.totalorder %s1099_s18, 9 }
   0xa   : > { %s1535_s20 = smov (%p27_p4, %s1533_s20), 0 }
   0xb   : > { %s55_s22 = ssub.s32 %s1095_s17, %s1535_s20  ;;  %143 = sbr.rel (%p847_p6) target bundleno = 31 (0x1f), region = 20 }
   0xc   : > { %s57_s23 = sor.u32 %s56_s21, %s55_s22 }
   0xd   : > { %p58_p5 = scmp.eq.s32.totalorder %s57_s23, 0 }
   0xf   : > { %s1174_s25 = scalar_select %p58_p5, %s1079_s13, %s60_s24  }
  0x10   : > { %155 = sbr.rel (!%p69_p3) target bundleno = 31 (0x1f), region = 28  ;;  %s157_s26 = sand.u32 (%p69_p3), 1, %s1079_s13  }
  0x11   : > { %s984_s27 = smul.u32 (%p69_p3), 48, %s1095_s17  ;;  %s848_s28 = sshll.u32 (%p69_p3), %s157_s26, 7 }
  0x12   : > { %s159_s7 = scalar_lea.vmem (%p69_p3), [#allocation2], %s848_s28 }
  0x13   : > { %s162_s29 = sadd.s32 (%p69_p3), %s1091_s16, %s984_s27 }
  0x14   : > { %s851_s30 = sshll.u32 (%p69_p3), %s162_s29, 3 }
  0x15   : > { %s1183_s6 = scalar_lea.vmem %s1521_s1, %s851_s30 }
  0x16   : > { %v223_v0 = vld [vmem:[%s1183_s6] sm:$0xff]  ;;  %v225_v1 = vld [vmem:[%s1183_s6 + $0x18] sm:$0xff]  ;;  %v227_v2 = vld [vmem:[%s1183_s6 + $0x30] sm:$0xff] }
  0x17   : > { %224 = vst [vmem:[%s159_s7] sm:$0xff] %v223_v0  ;;  %226 = vst [vmem:[%s159_s7 + $0x8] sm:$0xff] %v225_v1  ;;  %v229_v3 = vld [vmem:[%s1183_s6 + $0x48] sm:$0xff]  ;;  %v231_v4 = vld [vmem:[%s1183_s6 + $0x60] sm:$0xff] }
  0x18   : > { %228 = vst [vmem:[%s159_s7 + $0x10] sm:$0xff] %v227_v2  ;;  %v233_v5 = vld [vmem:[%s1183_s6 + $0x78] sm:$0xff]  ;;  %230 = vst [vmem:[%s159_s7 + $0x18] sm:$0xff] %v229_v3  ;;  %v235_v6 = vld [vmem:[%s1183_s6 + $0x90] sm:$0xff] }
  0x19   : > { %232 = vst [vmem:[%s159_s7 + $0x20] sm:$0xff] %v231_v4  ;;  %234 = vst [vmem:[%s159_s7 + $0x28] sm:$0xff] %v233_v5  ;;  %v237_v7 = vld [vmem:[%s1183_s6 + $0xa8] sm:$0xff]  ;;  %v239_v8 = vld [vmem:[%s1183_s6 + $0xc0] sm:$0xff] }
  0x1a   : > { %236 = vst [vmem:[%s159_s7 + $0x30] sm:$0xff] %v235_v6  ;;  %238 = vst [vmem:[%s159_s7 + $0x38] sm:$0xff] %v237_v7  ;;  %v241_v9 = vld [vmem:[%s1183_s6 + $0xd8] sm:$0xff]  ;;  %v243_v10 = vld [vmem:[%s1183_s6 + $0xf0] sm:$0xff] }
  0x1b   : > { %240 = vst [vmem:[%s159_s7 + $0x40] sm:$0xff] %v239_v8  ;;  %v245_v11 = vld [vmem:[%s1183_s6 + $0x108] sm:$0xff]  ;;  %242 = vst [vmem:[%s159_s7 + $0x48] sm:$0xff] %v241_v9  ;;  %v247_v12 = vld [vmem:[%s1183_s6 + $0x120] sm:$0xff] }
  0x1c   : > { %244 = vst [vmem:[%s159_s7 + $0x50] sm:$0xff] %v243_v10  ;;  %246 = vst [vmem:[%s159_s7 + $0x58] sm:$0xff] %v245_v11  ;;  %v249_v13 = vld [vmem:[%s1183_s6 + $0x138] sm:$0xff]  ;;  %v251_v14 = vld [vmem:[%s1183_s6 + $0x150] sm:$0xff] }
  0x1d   : > { %248 = vst [vmem:[%s159_s7 + $0x60] sm:$0xff] %v247_v12  ;;  %250 = vst [vmem:[%s159_s7 + $0x68] sm:$0xff] %v249_v13  ;;  %v253_v15 = vld [vmem:[%s1183_s6 + $0x168] sm:$0xff] }
  0x1e   : > { %252 = vst [vmem:[%s159_s7 + $0x70] sm:$0xff] %v251_v14  ;;  %254 = vst [vmem:[%s159_s7 + $0x78] sm:$0xff] %v253_v15 }
  0x1f PF: > { %p852_p7 = scmp.ge.s32.totalorder %s1099_s18, 1  ;;  %p259_p8 = scmp.lt.s32.totalorder %s1099_s18, 10 }
  0x21   : > { %p260_p9 = pnand %p852_p7, %p259_p8 }
  0x22   : > { %s266_s8 = sand.u32 (!%p260_p9), 1, %s1075_s12   ;;  %s854_s9 = sshll.u32 (!%p260_p9), %s1087_s15, 4 }
  0x23   : > { %263 = sbr.rel (%p260_p9) target bundleno = 474 (0x1da), region = 66  ;;  %s853_s10 = sshll.u32 (!%p260_p9), %s266_s8, 7 }
  0x24   : > { %p295_p10 = scmp.lt.s32.totalorder (!%p260_p9), %s854_s9, 47  ;;  %s1215_s28 = scalar_lea.vmem (!%p260_p9), [#allocation2], %s853_s10 }
  0x25   : > { %p858_p11 = scmp.ne.s32.totalorder (!%p260_p9), %s1083_s14, 0 }
  0x28   : > { %s1537_s9 = smov (!%p295_p10, %s854_s9), 47  ;;  %310 = sbr.rel (%p858_p11) target bundleno = 54 (0x36), region = 74 }
  0x29   : > { %s855_s11 = sshll.u32 %s1537_s9, 3 }
  0x2a   : > { %s1208_s23 = scalar_lea.vmem %s1520_s0, %s855_s11  ;;  %s1213_s27 = scalar_lea.vmem %s1523_s3, %s855_s11 }
  0x2d   : > { %v1101_v16 = vmov 0.0  }
  0x2e   : > { %311 = vst [vmem:[%s1213_s27] sm:$0xff] %v1101_v16  ;;  %312 = vst [vmem:[%s1213_s27 + $0x8] sm:$0xff] %v1101_v16 }
  0x2f   : > { %313 = vst [vmem:[%s1213_s27 + $0x10] sm:$0xff] %v1101_v16  ;;  %314 = vst [vmem:[%s1213_s27 + $0x18] sm:$0xff] %v1101_v16 }
  0x30   : > { %315 = vst [vmem:[%s1213_s27 + $0x20] sm:$0xff] %v1101_v16  ;;  %316 = vst [vmem:[%s1213_s27 + $0x28] sm:$0xff] %v1101_v16 }
  0x31   : > { %317 = vst [vmem:[%s1213_s27 + $0x30] sm:$0xff] %v1101_v16  ;;  %318 = vst [vmem:[%s1213_s27 + $0x38] sm:$0xff] %v1101_v16 }
  0x32   : > { %319 = vst [vmem:[%s1213_s27 + $0x40] sm:$0xff] %v1101_v16  ;;  %320 = vst [vmem:[%s1213_s27 + $0x48] sm:$0xff] %v1101_v16 }
  0x33   : > { %321 = vst [vmem:[%s1213_s27 + $0x50] sm:$0xff] %v1101_v16  ;;  %322 = vst [vmem:[%s1213_s27 + $0x58] sm:$0xff] %v1101_v16 }
  0x34   : > { %323 = vst [vmem:[%s1213_s27 + $0x60] sm:$0xff] %v1101_v16  ;;  %324 = vst [vmem:[%s1213_s27 + $0x68] sm:$0xff] %v1101_v16 }
  0x35   : > { %325 = vst [vmem:[%s1213_s27 + $0x70] sm:$0xff] %v1101_v16  ;;  %326 = vst [vmem:[%s1213_s27 + $0x78] sm:$0xff] %v1101_v16 }
  0x36 PF: > { %s859_s12 = sshll.u32 %s1083_s14, 7  ;;  %v361_v17 = vld [vmem:[%s1215_s28] sm:$0xff]  ;;  %v362_v35 = vld [vmem:[%s1215_s28 + $0x8] sm:$0xff]  ;;  %v363_v37 = vld [vmem:[%s1215_s28 + $0x10] sm:$0xff]  ;;  %p860_p12 = scmp.ne.s32.totalorder %s1083_s14, %s1087_s15 }
  0x37   : > { %v369_v18 = vld [vmem:[%s1215_s28 + $0x40] sm:$0xff]  ;;  %s1240_s4 = scalar_lea.vmem %s1522_s2, %s859_s12  ;;  %928 = vmatprep.mubr.f32.mxu0 %v361_v17  ;;  %v370_v36 = vld [vmem:[%s1215_s28 + $0x48] sm:$0xff]  ;;  %v371_v38 = vld [vmem:[%s1215_s28 + $0x50] sm:$0xff] }
  0x38   : > { %940 = vmatprep.mubr.f32.mxu1 %v369_v18  ;;  %v1243_v19 = vld [vmem:[%s1240_s4 + $0x78] sm:$0xff]  ;;  %v1246_v20 = vld [vmem:[%s1240_s4 + $0x70] sm:$0xff]  ;;  %v1253_v21 = vld [vmem:[%s1240_s4 + $0x68] sm:$0xff] }
  0x39   : > { %896 = vmatprep.subr.mxu0 %v1243_v19  ;;  %952 = vmatprep.subr.mxu1 %v1243_v19  ;;  %v1260_v22 = vld [vmem:[%s1240_s4 + $0x60] sm:$0xff]  ;;  %v1267_v23 = vld [vmem:[%s1240_s4 + $0x58] sm:$0xff]  ;;  %v1274_v24 = vld [vmem:[%s1240_s4 + $0x50] sm:$0xff] }
  0x3a   : > { %897 = vmatpush3.msra.mxu0 %v1243_v19  ;;  %968 = vmatpush3.msra.mxu1 %v1243_v19  ;;  %v1281_v25 = vld [vmem:[%s1240_s4 + $0x48] sm:$0xff]  ;;  %v1288_v26 = vld [vmem:[%s1240_s4 + $0x40] sm:$0xff]  ;;  %v1295_v27 = vld [vmem:[%s1240_s4 + $0x38] sm:$0xff] }
  0x3b   : > { %898 = vmatprep.subr.mxu0 %v1246_v20  ;;  %953 = vmatprep.subr.mxu1 %v1246_v20  ;;  %v1302_v28 = vld [vmem:[%s1240_s4 + $0x30] sm:$0xff]  ;;  %v1309_v29 = vld [vmem:[%s1240_s4 + $0x28] sm:$0xff]  ;;  %v1316_v30 = vld [vmem:[%s1240_s4 + $0x20] sm:$0xff] }
  0x3c   : > { %899 = vmatpush3.msra.mxu0 %v1246_v20  ;;  %969 = vmatpush3.msra.mxu1 %v1246_v20  ;;  %v1323_v31 = vld [vmem:[%s1240_s4 + $0x18] sm:$0xff]  ;;  %v1330_v32 = vld [vmem:[%s1240_s4 + $0x10] sm:$0xff]  ;;  %v1337_v33 = vld [vmem:[%s1240_s4 + $0x8] sm:$0xff] }
  0x3d   : > { %900 = vmatprep.subr.mxu0 %v1253_v21  ;;  %954 = vmatprep.subr.mxu1 %v1253_v21  ;;  %v1344_v34 = vld [vmem:[%s1240_s4] sm:$0xff]  ;;  %v364_v39 = vld [vmem:[%s1215_s28 + $0x18] sm:$0xff]  ;;  %v366_v43 = vld [vmem:[%s1215_s28 + $0x28] sm:$0xff] }
  0x3e   : > { %901 = vmatpush3.msra.mxu0 %v1253_v21  ;;  %970 = vmatpush3.msra.mxu1 %v1253_v21  ;;  %v372_v40 = vld [vmem:[%s1215_s28 + $0x58] sm:$0xff]  ;;  %v365_v41 = vld [vmem:[%s1215_s28 + $0x20] sm:$0xff]  ;;  %v374_v44 = vld [vmem:[%s1215_s28 + $0x68] sm:$0xff] }
  0x3f   : > { %902 = vmatprep.subr.mxu0 %v1260_v22  ;;  %955 = vmatprep.subr.mxu1 %v1260_v22  ;;  %v373_v42 = vld [vmem:[%s1215_s28 + $0x60] sm:$0xff]  ;;  %v367_v45 = vld [vmem:[%s1215_s28 + $0x30] sm:$0xff]  ;;  %v368_v47 = vld [vmem:[%s1215_s28 + $0x38] sm:$0xff] }
  0x40   : > { %903 = vmatpush3.msra.mxu0 %v1260_v22  ;;  %971 = vmatpush3.msra.mxu1 %v1260_v22  ;;  %v375_v46 = vld [vmem:[%s1215_s28 + $0x70] sm:$0xff]  ;;  %v376_v48 = vld [vmem:[%s1215_s28 + $0x78] sm:$0xff]  ;;  %v346_v49 = vld [vmem:[%s1213_s27 + $0x8] sm:$0xff] }
  0x41   : > { %904 = vmatprep.subr.mxu0 %v1267_v23  ;;  %956 = vmatprep.subr.mxu1 %v1267_v23  ;;  %v354_v50 = vld [vmem:[%s1213_s27 + $0x48] sm:$0xff]  ;;  %v345_v53 = vld [vmem:[%s1213_s27] sm:$0xff]  ;;  %v348_v59 = vld [vmem:[%s1213_s27 + $0x18] sm:$0xff] }
  0x42   : > { %905 = vmatpush3.msra.mxu0 %v1267_v23  ;;  %972 = vmatpush3.msra.mxu1 %v1267_v23  ;;  %v353_v54 = vld [vmem:[%s1213_s27 + $0x40] sm:$0xff]  ;;  %v356_v60 = vld [vmem:[%s1213_s27 + $0x58] sm:$0xff]  ;;  %v347_v1 = vld [vmem:[%s1213_s27 + $0x10] sm:$0xff] }
  0x43   : > { %906 = vmatprep.subr.mxu0 %v1274_v24  ;;  %957 = vmatprep.subr.mxu1 %v1274_v24  ;;  %v355_v2 = vld [vmem:[%s1213_s27 + $0x50] sm:$0xff]  ;;  %v350_v7 = vld [vmem:[%s1213_s27 + $0x28] sm:$0xff]  ;;  %v349_v13 = vld [vmem:[%s1213_s27 + $0x20] sm:$0xff] }
  0x44   : > { %907 = vmatpush3.msra.mxu0 %v1274_v24  ;;  %973 = vmatpush3.msra.mxu1 %v1274_v24  ;;  %v358_v8 = vld [vmem:[%s1213_s27 + $0x68] sm:$0xff]  ;;  %v357_v14 = vld [vmem:[%s1213_s27 + $0x60] sm:$0xff] }
  0x45   : > { %908 = vmatprep.subr.mxu0 %v1281_v25  ;;  %958 = vmatprep.subr.mxu1 %v1281_v25 }
  0x46   : > { %909 = vmatpush3.msra.mxu0 %v1281_v25  ;;  %974 = vmatpush3.msra.mxu1 %v1281_v25 }
  0x47   : > { %910 = vmatprep.subr.mxu0 %v1288_v26  ;;  %959 = vmatprep.subr.mxu1 %v1288_v26 }
  0x48   : > { %911 = vmatpush3.msra.mxu0 %v1288_v26  ;;  %975 = vmatpush3.msra.mxu1 %v1288_v26 }
  0x49   : > { %912 = vmatprep.subr.mxu0 %v1295_v27  ;;  %960 = vmatprep.subr.mxu1 %v1295_v27 }
  0x4a   : > { %913 = vmatpush3.msra.mxu0 %v1295_v27  ;;  %976 = vmatpush3.msra.mxu1 %v1295_v27 }
  0x4b   : > { %914 = vmatprep.subr.mxu0 %v1302_v28  ;;  %961 = vmatprep.subr.mxu1 %v1302_v28 }
  0x4c   : > { %915 = vmatpush3.msra.mxu0 %v1302_v28  ;;  %977 = vmatpush3.msra.mxu1 %v1302_v28 }
  0x4d   : > { %916 = vmatprep.subr.mxu0 %v1309_v29  ;;  %962 = vmatprep.subr.mxu1 %v1309_v29 }
  0x4e   : > { %917 = vmatpush3.msra.mxu0 %v1309_v29  ;;  %978 = vmatpush3.msra.mxu1 %v1309_v29 }
  0x4f   : > { %918 = vmatprep.subr.mxu0 %v1316_v30  ;;  %963 = vmatprep.subr.mxu1 %v1316_v30 }
  0x50   : > { %919 = vmatpush3.msra.mxu0 %v1316_v30  ;;  %979 = vmatpush3.msra.mxu1 %v1316_v30 }
  0x51   : > { %920 = vmatprep.subr.mxu0 %v1323_v31  ;;  %964 = vmatprep.subr.mxu1 %v1323_v31 }
  0x52   : > { %921 = vmatpush3.msra.mxu0 %v1323_v31  ;;  %980 = vmatpush3.msra.mxu1 %v1323_v31 }
  0x53   : > { %922 = vmatprep.subr.mxu0 %v1330_v32  ;;  %965 = vmatprep.subr.mxu1 %v1330_v32 }
  0x54   : > { %923 = vmatpush3.msra.mxu0 %v1330_v32  ;;  %981 = vmatpush3.msra.mxu1 %v1330_v32 }
  0x55   : > { %924 = vmatprep.subr.mxu0 %v1337_v33  ;;  %966 = vmatprep.subr.mxu1 %v1337_v33 }
  0x56   : > { %925 = vmatpush3.msra.mxu0 %v1337_v33  ;;  %982 = vmatpush3.msra.mxu1 %v1337_v33 }
  0x57   : > { %926 = vmatprep.subr.mxu0 %v1344_v34  ;;  %967 = vmatprep.subr.mxu1 %v1344_v34 }
  0x58   : > { %927 = vmatpush3.msra.mxu0 %v1344_v34  ;;  %983 = vmatpush3.msra.mxu1 %v1344_v34 }
  0x59   : > { %929 = vmatmul.mubr.f32.vlgmr.msra.gmra.mxu0 %v362_v35  ;;  %941 = vmatmul.mubr.f32.vlgmr.msra.gmra.mxu1 %v370_v36  ;;  %v352_v35 = vld [vmem:[%s1213_s27 + $0x38] sm:$0xff] }
  0x5a   : > { %931 = vmatprep.mubr.f32.mxu0 %v363_v37  ;;  %943 = vmatprep.mubr.f32.mxu1 %v371_v38  ;;  %v360_v36 = vld [vmem:[%s1213_s27 + $0x78] sm:$0xff] }
  0x5d   : > { %932 = vmatmul.mubr.f32.gmra.mxu0 %v364_v39  ;;  %944 = vmatmul.mubr.f32.gmra.mxu1 %v372_v40 }
  0x5e   : > { %934 = vmatprep.mubr.f32.mxu0 %v365_v41  ;;  %946 = vmatprep.mubr.f32.mxu1 %v373_v42  ;;  %v351_v41 = vld [vmem:[%s1213_s27 + $0x30] sm:$0xff] }
  0x5f   : > { %v359_v42 = vld [vmem:[%s1213_s27 + $0x70] sm:$0xff] }
  0x61   : > { %935 = vmatmul.mubr.f32.gmra.mxu0 %v366_v43  ;;  %947 = vmatmul.mubr.f32.gmra.mxu1 %v374_v44 }
  0x62   : > { %937 = vmatprep.mubr.f32.mxu0 %v367_v45  ;;  %949 = vmatprep.mubr.f32.mxu1 %v375_v46 }
  0x65   : > { %938 = vmatmul.mubr.f32.gmra.mxu0 %v368_v47  ;;  %950 = vmatmul.mubr.f32.gmra.mxu1 %v376_v48 }
 0x119   : > { %v930_v51 = vpop.f32.mrf.mxu0  ;;  %v942_v52 = vpop.f32.mrf.mxu1 }
 0x11a   : > { %v523_v55 = vadd.f32 %v930_v51, %v346_v49  ;;  %v531_v56 = vadd.f32 %v942_v52, %v354_v50 }
 0x11b   : > { %v443_v57 = vpop.f32.mrf.mxu0  ;;  %v483_v58 = vpop.f32.mrf.mxu1 }
 0x11c   : > { %539 = vst [vmem:[%s1213_s27 + $0x8] sm:$0xff] %v523_v55  ;;  %547 = vst [vmem:[%s1213_s27 + $0x48] sm:$0xff] %v531_v56  ;;  %v522_v61 = vadd.f32 %v443_v57, %v345_v53  ;;  %v530_v62 = vadd.f32 %v483_v58, %v353_v54 }
 0x11d   : > { %v933_v63 = vpop.f32.mrf.mxu0  ;;  %v945_v0 = vpop.f32.mrf.mxu1 }
 0x11e   : > { %538 = vst [vmem:[%s1213_s27] sm:$0xff] %v522_v61  ;;  %546 = vst [vmem:[%s1213_s27 + $0x40] sm:$0xff] %v530_v62  ;;  %v525_v3 = vadd.f32 %v933_v63, %v348_v59  ;;  %v533_v4 = vadd.f32 %v945_v0, %v356_v60 }
 0x11f   : > { %v453_v5 = vpop.f32.mrf.mxu0  ;;  %v493_v6 = vpop.f32.mrf.mxu1 }
 0x120   : > { %541 = vst [vmem:[%s1213_s27 + $0x18] sm:$0xff] %v525_v3  ;;  %549 = vst [vmem:[%s1213_s27 + $0x58] sm:$0xff] %v533_v4  ;;  %v524_v9 = vadd.f32 %v453_v5, %v347_v1  ;;  %v532_v10 = vadd.f32 %v493_v6, %v355_v2 }
 0x121   : > { %v936_v11 = vpop.f32.mrf.mxu0  ;;  %v948_v12 = vpop.f32.mrf.mxu1 }
 0x122   : > { %540 = vst [vmem:[%s1213_s27 + $0x10] sm:$0xff] %v524_v9  ;;  %548 = vst [vmem:[%s1213_s27 + $0x50] sm:$0xff] %v532_v10  ;;  %v527_v15 = vadd.f32 %v936_v11, %v350_v7  ;;  %v535_v16 = vadd.f32 %v948_v12, %v358_v8 }
 0x123   : > { %v463_v17 = vpop.f32.mrf.mxu0  ;;  %v503_v18 = vpop.f32.mrf.mxu1 }
 0x124   : > { %543 = vst [vmem:[%s1213_s27 + $0x28] sm:$0xff] %v527_v15  ;;  %551 = vst [vmem:[%s1213_s27 + $0x68] sm:$0xff] %v535_v16  ;;  %v526_v37 = vadd.f32 %v463_v17, %v349_v13  ;;  %v534_v38 = vadd.f32 %v503_v18, %v357_v14 }
 0x125   : > { %v939_v39 = vpop.f32.mrf.mxu0  ;;  %v951_v40 = vpop.f32.mrf.mxu1 }
 0x126   : > { %542 = vst [vmem:[%s1213_s27 + $0x20] sm:$0xff] %v526_v37  ;;  %550 = vst [vmem:[%s1213_s27 + $0x60] sm:$0xff] %v534_v38  ;;  %v529_v43 = vadd.f32 %v939_v39, %v352_v35  ;;  %v537_v44 = vadd.f32 %v951_v40, %v360_v36  ;;  %557 = sbr.rel (%p860_p12) target bundleno = 310 (0x136), region = 78 }
 0x127   : > { %v473_v45 = vpop.f32.mrf.mxu0  ;;  %v513_v46 = vpop.f32.mrf.mxu1 }
 0x128   : > { %545 = vst [vmem:[%s1213_s27 + $0x38] sm:$0xff] %v529_v43  ;;  %553 = vst [vmem:[%s1213_s27 + $0x78] sm:$0xff] %v537_v44  ;;  %v528_v47 = vadd.f32 %v473_v45, %v351_v41  ;;  %v536_v48 = vadd.f32 %v513_v46, %v359_v42 }
 0x12a   : > { %544 = vst [vmem:[%s1213_s27 + $0x30] sm:$0xff] %v528_v47  ;;  %552 = vst [vmem:[%s1213_s27 + $0x70] sm:$0xff] %v536_v48 }
 0x12b   : > { %v558_v49 = vld [vmem:[%s1213_s27] sm:$0xff]  ;;  %v559_v50 = vld [vmem:[%s1213_s27 + $0x8] sm:$0xff]  ;;  %v560_v51 = vld [vmem:[%s1213_s27 + $0x10] sm:$0xff] }
 0x12c   : > { %v574_v52 = vadd.f32 %v558_v49, %v1344_v34  ;;  %v575_v53 = vadd.f32 %v559_v50, %v1337_v33  ;;  %v576_v54 = vadd.f32 %v560_v51, %v1330_v32  ;;  %v561_v55 = vld [vmem:[%s1213_s27 + $0x18] sm:$0xff]  ;;  %v563_v57 = vld [vmem:[%s1213_s27 + $0x28] sm:$0xff]  ;;  %v566_v33 = vld [vmem:[%s1213_s27 + $0x40] sm:$0xff] }
 0x12d   : > { %v562_v56 = vld [vmem:[%s1213_s27 + $0x20] sm:$0xff]  ;;  %v577_v58 = vadd.f32 %v561_v55, %v1323_v31  ;;  %v579_v60 = vadd.f32 %v563_v57, %v1309_v29  ;;  %v567_v62 = vld [vmem:[%s1213_s27 + $0x48] sm:$0xff]  ;;  %v568_v29 = vld [vmem:[%s1213_s27 + $0x50] sm:$0xff] }
 0x12e   : > { %v578_v59 = vadd.f32 %v562_v56, %v1316_v30  ;;  %590 = vst [vmem:[%s1213_s27] sm:$0xff] %v574_v52  ;;  %591 = vst [vmem:[%s1213_s27 + $0x8] sm:$0xff] %v575_v53  ;;  %v582_v30 = vadd.f32 %v566_v33, %v1288_v26  ;;  %v569_v63 = vld [vmem:[%s1213_s27 + $0x58] sm:$0xff]  ;;  %v583_v0 = vadd.f32 %v567_v62, %v1281_v25  ;;  %v570_v1 = vld [vmem:[%s1213_s27 + $0x60] sm:$0xff] }
 0x12f   : > { %v565_v61 = vld [vmem:[%s1213_s27 + $0x38] sm:$0xff]  ;;  %592 = vst [vmem:[%s1213_s27 + $0x10] sm:$0xff] %v576_v54  ;;  %593 = vst [vmem:[%s1213_s27 + $0x18] sm:$0xff] %v577_v58  ;;  %v571_v26 = vld [vmem:[%s1213_s27 + $0x68] sm:$0xff]  ;;  %v586_v3 = vadd.f32 %v570_v1, %v1260_v22 }
 0x130   : > { %v581_v31 = vadd.f32 %v565_v61, %v1295_v27  ;;  %594 = vst [vmem:[%s1213_s27 + $0x20] sm:$0xff] %v578_v59  ;;  %595 = vst [vmem:[%s1213_s27 + $0x28] sm:$0xff] %v579_v60  ;;  %v585_v27 = vadd.f32 %v569_v63, %v1267_v23  ;;  %v587_v4 = vadd.f32 %v571_v26, %v1253_v21  ;;  %v573_v5 = vld [vmem:[%s1213_s27 + $0x78] sm:$0xff] }
 0x131   : > { %v564_v34 = vld [vmem:[%s1213_s27 + $0x30] sm:$0xff]  ;;  %598 = vst [vmem:[%s1213_s27 + $0x40] sm:$0xff] %v582_v30  ;;  %599 = vst [vmem:[%s1213_s27 + $0x48] sm:$0xff] %v583_v0  ;;  %v589_v23 = vadd.f32 %v573_v5, %v1243_v19 }
 0x132   : > { %v580_v32 = vadd.f32 %v564_v34, %v1302_v28  ;;  %v584_v28 = vadd.f32 %v568_v29, %v1274_v24  ;;  %v572_v2 = vld [vmem:[%s1213_s27 + $0x70] sm:$0xff]  ;;  %597 = vst [vmem:[%s1213_s27 + $0x38] sm:$0xff] %v581_v31  ;;  %601 = vst [vmem:[%s1213_s27 + $0x58] sm:$0xff] %v585_v27 }
 0x133   : > { %v588_v25 = vadd.f32 %v572_v2, %v1246_v20  ;;  %602 = vst [vmem:[%s1213_s27 + $0x60] sm:$0xff] %v586_v3  ;;  %603 = vst [vmem:[%s1213_s27 + $0x68] sm:$0xff] %v587_v4 }
 0x134   : > { %596 = vst [vmem:[%s1213_s27 + $0x30] sm:$0xff] %v580_v32  ;;  %600 = vst [vmem:[%s1213_s27 + $0x50] sm:$0xff] %v584_v28 }
 0x135   : > { %604 = vst [vmem:[%s1213_s27 + $0x70] sm:$0xff] %v588_v25  ;;  %605 = vst [vmem:[%s1213_s27 + $0x78] sm:$0xff] %v589_v23 }
 0x136 PF: > { %p861_p13 = scmp.ne.s32.totalorder %s1083_s14, 2 }
 0x138   : > { %609 = sbr.rel (%p861_p13) target bundleno = 474 (0x1da), region = 82 }
 0x13d   : > { %v612_v20 = vld [vmem:[%s1208_s23 + $0x10] sm:$0xff]  ;;  %v610_v21 = vld [vmem:[%s1208_s23] sm:$0xff]  ;;  %v1102_v22 = vmov 0   ;;  %v613_v19 = vld [vmem:[%s1208_s23 + $0x18] sm:$0xff] }
 0x13e   : > { %1044 = vset.pattern.permute.xlu1 %v1102_v22  ;;  %1043 = vset.pattern.permute.xlu0 %v1102_v22  ;;  %v611_v24 = vld [vmem:[%s1208_s23 + $0x8] sm:$0xff]  ;;  %v614_v7 = vld [vmem:[%s1208_s23 + $0x20] sm:$0xff]  ;;  %v617_v8 = vld [vmem:[%s1208_s23 + $0x38] sm:$0xff] }
 0x13f   : > { %654 = vperm.xlu1 %1044, %v612_v20   ;;  %644 = vperm.xlu0 %1043, %v610_v21   ;;  %v615_v6 = vld [vmem:[%s1208_s23 + $0x28] sm:$0xff]  ;;  %v616_v9 = vld [vmem:[%s1208_s23 + $0x30] sm:$0xff]  ;;  %v618_v11 = vld [vmem:[%s1208_s23 + $0x40] sm:$0xff] }
 0x140   : > { %v619_v10 = vld [vmem:[%s1208_s23 + $0x48] sm:$0xff]  ;;  %v621_v12 = vld [vmem:[%s1208_s23 + $0x58] sm:$0xff]  ;;  %v620_v13 = vld [vmem:[%s1208_s23 + $0x50] sm:$0xff] }
 0x141   : > { %v623_v14 = vld [vmem:[%s1208_s23 + $0x68] sm:$0xff]  ;;  %v622_v15 = vld [vmem:[%s1208_s23 + $0x60] sm:$0xff]  ;;  %v625_v16 = vld [vmem:[%s1208_s23 + $0x78] sm:$0xff] }
 0x142   : > { %v624_v17 = vld [vmem:[%s1208_s23 + $0x70] sm:$0xff]  ;;  %v626_v35 = vld [vmem:[%s1213_s27] sm:$0xff]  ;;  %v629_v40 = vld [vmem:[%s1213_s27 + $0x18] sm:$0xff] }
 0x143   : > { %659 = vperm.xlu1 %1044, %v613_v19   ;;  %649 = vperm.xlu0 %1043, %v611_v24   ;;  %v628_v18 = vld [vmem:[%s1213_s27 + $0x10] sm:$0xff]  ;;  %v627_v41 = vld [vmem:[%s1213_s27 + $0x8] sm:$0xff]  ;;  %v630_v47 = vld [vmem:[%s1213_s27 + $0x20] sm:$0xff] }
 0x144   : > { %v631_v46 = vld [vmem:[%s1213_s27 + $0x28] sm:$0xff]  ;;  %v633_v52 = vld [vmem:[%s1213_s27 + $0x38] sm:$0xff]  ;;  %v632_v53 = vld [vmem:[%s1213_s27 + $0x30] sm:$0xff] }
 0x145   : > { %v635_v58 = vld [vmem:[%s1213_s27 + $0x48] sm:$0xff]  ;;  %v634_v59 = vld [vmem:[%s1213_s27 + $0x40] sm:$0xff]  ;;  %v637_v32 = vld [vmem:[%s1213_s27 + $0x58] sm:$0xff] }
 0x146   : > { %v636_v31 = vld [vmem:[%s1213_s27 + $0x50] sm:$0xff]  ;;  %v639_v0 = vld [vmem:[%s1213_s27 + $0x68] sm:$0xff]  ;;  %v638_v28 = vld [vmem:[%s1213_s27 + $0x60] sm:$0xff] }
 0x147   : > { %669 = vperm.xlu1 %1044, %v615_v6   ;;  %664 = vperm.xlu0 %1043, %v614_v7   ;;  %v641_v3 = vld [vmem:[%s1213_s27 + $0x78] sm:$0xff]  ;;  %v640_v4 = vld [vmem:[%s1213_s27 + $0x70] sm:$0xff] }
 0x14b   : > { %679 = vperm.xlu1 %1044, %v617_v8   ;;  %674 = vperm.xlu0 %1043, %v616_v9  }
 0x14f   : > { %689 = vperm.xlu1 %1044, %v619_v10   ;;  %684 = vperm.xlu0 %1043, %v618_v11  }
 0x153   : > { %699 = vperm.xlu1 %1044, %v621_v12   ;;  %694 = vperm.xlu0 %1043, %v620_v13  }
 0x157   : > { %709 = vperm.xlu1 %1044, %v623_v14   ;;  %704 = vperm.xlu0 %1043, %v622_v15  }
 0x15b   : > { %719 = vperm.xlu1 %1044, %v625_v16   ;;  %714 = vperm.xlu0 %1043, %v624_v17  }
 0x1ba   : > { %v655_v36 = vpop.permute.xlu1 %654  ;;  %v645_v37 = vpop.permute.xlu0 %644 }
 0x1bb   : > { %v724_v38 = vmul.f32 %v655_v36, %v628_v18  ;;  %v722_v39 = vmul.f32 %v645_v37, %v626_v35 }
 0x1bd   : > { %740 = vst [vmem:[%s1213_s27 + $0x10] sm:$0xff] %v724_v38  ;;  %738 = vst [vmem:[%s1213_s27] sm:$0xff] %v722_v39 }
 0x1be   : > { %v660_v42 = vpop.permute.xlu1 %659  ;;  %v650_v43 = vpop.permute.xlu0 %649 }
 0x1bf   : > { %v725_v44 = vmul.f32 %v660_v42, %v629_v40  ;;  %v723_v45 = vmul.f32 %v650_v43, %v627_v41 }
 0x1c1   : > { %741 = vst [vmem:[%s1213_s27 + $0x18] sm:$0xff] %v725_v44  ;;  %739 = vst [vmem:[%s1213_s27 + $0x8] sm:$0xff] %v723_v45 }
 0x1c2   : > { %v670_v48 = vpop.permute.xlu1 %669  ;;  %v665_v49 = vpop.permute.xlu0 %664 }
 0x1c3   : > { %v727_v50 = vmul.f32 %v670_v48, %v631_v46  ;;  %v726_v51 = vmul.f32 %v665_v49, %v630_v47 }
 0x1c5   : > { %743 = vst [vmem:[%s1213_s27 + $0x28] sm:$0xff] %v727_v50  ;;  %742 = vst [vmem:[%s1213_s27 + $0x20] sm:$0xff] %v726_v51 }
 0x1c6   : > { %v680_v54 = vpop.permute.xlu1 %679  ;;  %v675_v55 = vpop.permute.xlu0 %674 }
 0x1c7   : > { %v729_v56 = vmul.f32 %v680_v54, %v633_v52  ;;  %v728_v57 = vmul.f32 %v675_v55, %v632_v53 }
 0x1c9   : > { %745 = vst [vmem:[%s1213_s27 + $0x38] sm:$0xff] %v729_v56  ;;  %744 = vst [vmem:[%s1213_s27 + $0x30] sm:$0xff] %v728_v57 }
 0x1ca   : > { %v690_v60 = vpop.permute.xlu1 %689  ;;  %v685_v34 = vpop.permute.xlu0 %684 }
 0x1cb   : > { %v731_v61 = vmul.f32 %v690_v60, %v635_v58  ;;  %v730_v33 = vmul.f32 %v685_v34, %v634_v59 }
 0x1cd   : > { %747 = vst [vmem:[%s1213_s27 + $0x48] sm:$0xff] %v731_v61  ;;  %746 = vst [vmem:[%s1213_s27 + $0x40] sm:$0xff] %v730_v33 }
 0x1ce   : > { %v700_v30 = vpop.permute.xlu1 %699  ;;  %v695_v62 = vpop.permute.xlu0 %694 }
 0x1cf   : > { %v733_v29 = vmul.f32 %v700_v30, %v637_v32  ;;  %v732_v63 = vmul.f32 %v695_v62, %v636_v31 }
 0x1d1   : > { %749 = vst [vmem:[%s1213_s27 + $0x58] sm:$0xff] %v733_v29  ;;  %748 = vst [vmem:[%s1213_s27 + $0x50] sm:$0xff] %v732_v63 }
 0x1d2   : > { %v710_v27 = vpop.permute.xlu1 %709  ;;  %v705_v1 = vpop.permute.xlu0 %704 }
 0x1d3   : > { %v735_v26 = vmul.f32 %v710_v27, %v639_v0  ;;  %v734_v2 = vmul.f32 %v705_v1, %v638_v28 }
 0x1d5   : > { %751 = vst [vmem:[%s1213_s27 + $0x68] sm:$0xff] %v735_v26  ;;  %750 = vst [vmem:[%s1213_s27 + $0x60] sm:$0xff] %v734_v2 }
 0x1d6   : > { %v720_v25 = vpop.permute.xlu1 %719  ;;  %v715_v5 = vpop.permute.xlu0 %714 }
 0x1d7   : > { %v737_v23 = vmul.f32 %v720_v25, %v641_v3  ;;  %v736_v20 = vmul.f32 %v715_v5, %v640_v4 }
 0x1d9   : > { %753 = vst [vmem:[%s1213_s27 + $0x78] sm:$0xff] %v737_v23  ;;  %752 = vst [vmem:[%s1213_s27 + $0x70] sm:$0xff] %v736_v20 }
 0x1da PF: > { %s13_s18 = sadd.s32 1, %s1099_s18   ;;  %s1524_s12 = smov %s1079_s13 }
 0x1db   : > { %p10_p0 = scmp.ge.s32.totalorder %s13_s18, 11   ;;  %s1525_s13 = smov %s1174_s25 }
 0x1dc   : > { %s1526_s14 = smov %s1091_s16  ;;  %s1527_s15 = smov %s1095_s17 }
 0x1dd   : > { %s1528_s16 = smov %s1531_s19  ;;  %s1529_s17 = smov %s1535_s20 }
 0x1de   :  { %12 = sbr.rel (!%p10_p0) target bundleno = 4 (0x4), region = 121 }

</bundles_post_ra>
